<compile_context>
chip_gen: v7x
topology: tpu7x:2x2x1
jax: 0.10.0
libtpu: 0.0.40
codegen_flags: <defaults>
</compile_context>

<pallas_src>
import jax
import jax.numpy as jnp
from jax.experimental import pallas as pl
from jax.experimental.pallas import tpu as pltpu


def _round_up(x, m):
    return (x + m - 1) // m * m


def _fused_chain_kernel(x1_ref, x2_ref, wu1_ref, b1_ref, w2_ref, b2_ref,
                        y1_ref, y2_ref, a12_ref):
    """Whole stage chain for one M-tile.

    Grid = (m_tiles, num_stages); the stage axis is the trailing 'arbitrary'
    axis, so the activation pair stays resident in the VMEM scratch `a12_ref`
    ([tm, 2H]: columns [:H] = input1, [H:] = input2) between stages and only
    the final pair is written back to HBM.
    """
    s = pl.program_id(1)
    H = y1_ref.shape[-1]

    # First stage of this M-tile: load activations from the HBM inputs.
    @pl.when(s == 0)
    def _():
        a12_ref[:, :H] = x1_ref[...].astype(a12_ref.dtype)
        a12_ref[:, H:] = x2_ref[...].astype(a12_ref.dtype)

    a12 = a12_ref[...]          # [tm, 2H]   (lane-aligned, H % 128 == 0)
    a2 = a12[:, H:]             # [tm, H]

    # input1 path: single K=2H MXU matmul (replaces two K=H matmuls + VPU add).
    acc1 = jnp.dot(a12, wu1_ref[0], preferred_element_type=jnp.float32)
    acc1 = acc1 + b1_ref[0].astype(jnp.float32)
    # input2 path.
    acc2 = jnp.dot(a2, w2_ref[0], preferred_element_type=jnp.float32)
    acc2 = acc2 + b2_ref[0].astype(jnp.float32)

    # Epilogue in f32 on the VPU, one cast back to the carried dtype.
    n1 = jnp.maximum(acc1, 0.0)
    n2 = jnp.maximum(acc2, 0.0)
    a12_ref[:, :H] = n1.astype(a12_ref.dtype)
    a12_ref[:, H:] = n2.astype(a12_ref.dtype)

    # Last stage: write the final activations of this M-tile to the outputs.
    @pl.when(s == pl.num_programs(1) - 1)
    def _():
        y1_ref[...] = n1.astype(y1_ref.dtype)
        y2_ref[...] = n2.astype(y2_ref.dtype)


def two_input_chain(x1, x2, wu1_stack, b1_stack, w2_stack, b2_stack, *, tm=None):
    """Run the whole two-input stage chain in ONE pallas_call.

    x1, x2:     [M, H]
    wu1_stack:  [S, 2H, H]   (per stage, [W1 ; U1] stacked along K)
    b1_stack:   [S, 1, H]
    w2_stack:   [S, H, H]
    b2_stack:   [S, 1, H]
    """
    M, H = x1.shape
    S = wu1_stack.shape[0]
    if H % 128 != 0:
        raise ValueError("hidden size must be a multiple of 128 (lane width)")

    if tm is None:
        tm = min(256, _round_up(M, 8))
    tm = _round_up(tm, 8)

    Mp = _round_up(M, tm)
    if Mp != M:
        pad = ((0, Mp - M), (0, 0))
        x1 = jnp.pad(x1, pad)
        x2 = jnp.pad(x2, pad)

    grid = (Mp // tm, S)
    dtype = x1.dtype
    bpe = jnp.dtype(dtype).itemsize

    # Advisory cost: per stage per row, 2*(2H)*H (fused path 1) + 2*H*H (path 2).
    flops = int(S) * int(Mp) * 6 * int(H) * int(H)
    bytes_accessed = (4 * Mp * H + S * (3 * H * H + 2 * H)) * bpe
    cost = pl.CostEstimate(flops=flops, transcendentals=0,
                           bytes_accessed=int(bytes_accessed))

    # VMEM budget: double-buffered activations/weights/outputs + carried scratch.
    per_stage_w = (2 * H * H + H * H + 2 * H) * bpe
    vmem_est = 2 * (2 * tm * H * bpe + per_stage_w + 2 * tm * H * bpe) \
        + tm * 2 * H * bpe + (2 << 20)
    vmem_limit = int(min(max(vmem_est, 16 << 20), 56 << 20))  # stay under v7x 64 MiB

    act_spec = pl.BlockSpec((tm, H), lambda m, s: (m, 0))

    y1, y2 = pl.pallas_call(
        _fused_chain_kernel,
        out_shape=(jax.ShapeDtypeStruct((Mp, H), dtype),
                   jax.ShapeDtypeStruct((Mp, H), dtype)),
        grid_spec=pltpu.PrefetchScalarGridSpec(
            num_scalar_prefetch=0,
            grid=grid,
            in_specs=[
                act_spec,                                             # x1
                act_spec,                                             # x2
                pl.BlockSpec((1, 2 * H, H), lambda m, s: (s, 0, 0)),  # WU1[s]
                pl.BlockSpec((1, 1, H), lambda m, s: (s, 0, 0)),      # b1[s]
                pl.BlockSpec((1, H, H), lambda m, s: (s, 0, 0)),      # W2[s]
                pl.BlockSpec((1, 1, H), lambda m, s: (s, 0, 0)),      # b2[s]
            ],
            out_specs=(act_spec, act_spec),
            scratch_shapes=[pltpu.VMEM((tm, 2 * H), dtype)],
        ),
        compiler_params=pltpu.CompilerParams(
            dimension_semantics=("parallel", "arbitrary"),
            vmem_limit_bytes=vmem_limit),
        cost_estimate=cost,
    )(x1, x2, wu1_stack, b1_stack, w2_stack, b2_stack)

    if Mp != M:
        y1 = y1[:M]
        y2 = y2[:M]
    return y1, y2


class TwoInputSequentialPallas:
    """JAX/Pallas equivalent of TwoInputSequential.

    forward(input1, input2) threads the pair through every stage in order,
    exactly like the PyTorch container.  Since all stages share shapes, the
    whole chain is executed in a single fused pallas_call with per-stage
    weights stacked along a leading stage axis and activations held in VMEM
    between stages.
    """

    def __init__(self, *stage_params):
        if not stage_params:
            raise ValueError("need at least one stage")
        self._stages = list(stage_params)
        wu1, b1, w2, b2 = [], [], [], []
        for (w1_s, u1_s, b1_s, w2_s, b2_s) in self._stages:
            wu1.append(jnp.concatenate([w1_s, u1_s], axis=0))   # [2H, H]
            b1.append(b1_s)
            w2.append(w2_s)
            b2.append(b2_s)
        self._wu1 = jnp.stack(wu1)   # [S, 2H, H]
        self._b1 = jnp.stack(b1)     # [S, 1, H]
        self._w2 = jnp.stack(w2)     # [S, H, H]
        self._b2 = jnp.stack(b2)     # [S, 1, H]

    def __len__(self):
        return len(self._stages)

    def __getitem__(self, idx):
        if isinstance(idx, slice):
            return TwoInputSequentialPallas(*self._stages[idx])
        return self._stages[idx]

    def forward(self, input1, input2, *, tm=None):
        return two_input_chain(input1, input2, self._wu1, self._b1,
                               self._w2, self._b2, tm=tm)

    __call__ = forward


def make_stage_params(key, hidden, dtype=jnp.float32):
    """Deterministic synthetic parameters for one stage."""
    k1, k2, k3, k4, k5 = jax.random.split(key, 5)
    scale = 1.0 / jnp.sqrt(jnp.float32(hidden))
    w1 = (jax.random.normal(k1, (hidden, hidden)) * scale).astype(dtype)
    u1 = (jax.random.normal(k2, (hidden, hidden)) * scale).astype(dtype)
    w2 = (jax.random.normal(k3, (hidden, hidden)) * scale).astype(dtype)
    b1 = (jax.random.normal(k4, (1, hidden)) * 0.1).astype(dtype)
    b2 = (jax.random.normal(k5, (1, hidden)) * 0.1).astype(dtype)
    return (w1, u1, b1, w2, b2)


def reference_forward(x1, x2, stages):
    """Pure-JAX reference of the same chain, for the correctness check."""
    for (w1, u1, b1, w2, b2) in stages:
        y1 = jnp.maximum(x1 @ w1 + x2 @ u1 + b1, 0.0)
        y2 = jnp.maximum(x2 @ w2 + b2, 0.0)
        x1, x2 = y1, y2
    return x1, x2


if __name__ == "__main__":
    key = jax.random.PRNGKey(0)
    k_in1, k_in2, k_s1, k_s2, k_s3 = jax.random.split(key, 5)

    # Lane-dense demo shapes: hidden padded up to the 128-lane width.
    batch, seq, hidden = 2, 8, 128
    M = batch * seq   # rows; hidden on the lane axis

    input1 = jax.random.normal(k_in1, (M, hidden), jnp.float32)
    input2 = jax.random.normal(k_in2, (M, hidden), jnp.float32)

    # Three chained two-input stages inside the sequential container.
    model = TwoInputSequentialPallas(
        make_stage_params(k_s1, hidden),
        make_stage_params(k_s2, hidden),
        make_stage_params(k_s3, hidden),
    )

    # tm=8 -> grid (2 M-tiles parallel, 3 stages arbitrary) in ONE pallas_call.
    out1, out2 = model(input1, input2, tm=8)
    out1, out2 = jax.block_until_ready((out1, out2))

    ref1, ref2 = reference_forward(input1, input2, model._stages)
    assert jnp.allclose(out1, ref1, atol=1e-4, rtol=1e-4), "y1 mismatch"
    assert jnp.allclose(out2, ref2, atol=1e-4, rtol=1e-4), "y2 mismatch"

    print("KERNEL_OK")
</pallas_src>

<mosaic_0001>
module attributes {stable_mosaic.version = 11 : i64} {
  func.func @_fused_chain_kernel(%arg0: i32, %arg1: i32, %arg2: memref<8x128xf32, #tpu.memory_space<vmem>>, %arg3: memref<8x128xf32, #tpu.memory_space<vmem>>, %arg4: memref<1x256x128xf32, #tpu.memory_space<vmem>>, %arg5: memref<1x1x128xf32, #tpu.memory_space<vmem>>, %arg6: memref<1x128x128xf32, #tpu.memory_space<vmem>>, %arg7: memref<1x1x128xf32, #tpu.memory_space<vmem>>, %arg8: memref<8x128xf32, #tpu.memory_space<vmem>>, %arg9: memref<8x128xf32, #tpu.memory_space<vmem>>, %arg10: memref<8x256xf32, #tpu.memory_space<vmem>>) attributes {dimension_semantics = [#tpu.dimension_semantics<parallel>, #tpu.dimension_semantics<arbitrary>], iteration_bounds = array<i64: 2, 3>, scalar_prefetch = 0 : i64, scratch_operands = 1 : i64, tpu.core_type = #tpu.core_type<tc>, window_params = [{transform_indices = @transform_0, window_bounds = array<i64: 8, 128>}, {transform_indices = @transform_1, window_bounds = array<i64: 8, 128>}, {transform_indices = @transform_2, window_bounds = array<i64: 1, 256, 128>}, {transform_indices = @transform_3, window_bounds = array<i64: 1, 1, 128>}, {transform_indices = @transform_4, window_bounds = array<i64: 1, 128, 128>}, {transform_indices = @transform_5, window_bounds = array<i64: 1, 1, 128>}, {transform_indices = @transform_6, window_bounds = array<i64: 8, 128>}, {transform_indices = @transform_7, window_bounds = array<i64: 8, 128>}]} {
    %c0_i32 = arith.constant 0 : i32
    %0 = arith.cmpi eq, %arg1, %c0_i32 : i32
    %1 = arith.extui %0 : i1 to i32
    %c0_i32_0 = arith.constant 0 : i32
    %2 = arith.cmpi ne, %1, %c0_i32_0 : i32
    scf.if %2 {
      %c0_21 = arith.constant 0 : index
      %c0_22 = arith.constant 0 : index
      %28 = vector.load %arg2[%c0_21, %c0_22] : memref<8x128xf32, #tpu.memory_space<vmem>>, vector<8x128xf32>
      %c0_23 = arith.constant 0 : index
      %c0_24 = arith.constant 0 : index
      %29 = vector.load %arg10[%c0_23, %c0_24] : memref<8x256xf32, #tpu.memory_space<vmem>>, vector<8x128xf32>
      tpu.vector_store %arg10[%c0_23, %c0_24], %28 {strides = array<i32>} : memref<8x256xf32, #tpu.memory_space<vmem>>, vector<8x128xf32>,
      %c0_25 = arith.constant 0 : index
      %c0_26 = arith.constant 0 : index
      %30 = vector.load %arg3[%c0_25, %c0_26] : memref<8x128xf32, #tpu.memory_space<vmem>>, vector<8x128xf32>
      %c0_27 = arith.constant 0 : index
      %c128_28 = arith.constant 128 : index
      %31 = vector.load %arg10[%c0_27, %c128_28] : memref<8x256xf32, #tpu.memory_space<vmem>>, vector<8x128xf32>
      tpu.vector_store %arg10[%c0_27, %c128_28], %30 {strides = array<i32>} : memref<8x256xf32, #tpu.memory_space<vmem>>, vector<8x128xf32>,
    } else {
    }
    %c0 = arith.constant 0 : index
    %c0_1 = arith.constant 0 : index
    %3 = vector.load %arg10[%c0, %c0_1] : memref<8x256xf32, #tpu.memory_space<vmem>>, vector<8x256xf32>
    %4 = vector.extract_strided_slice %3 {offsets = [0, 128], sizes = [8, 128], strides = [1, 1]} : vector<8x256xf32> to vector<8x128xf32>
    %c0_2 = arith.constant 0 : index
    %c0_3 = arith.constant 0 : index
    %c0_4 = arith.constant 0 : index
    %5 = vector.load %arg4[%c0_2, %c0_3, %c0_4] : memref<1x256x128xf32, #tpu.memory_space<vmem>>, vector<1x256x128xf32>
    %6 = vector.shape_cast %5 : vector<1x256x128xf32> to vector<256x128xf32>
    %cst = arith.constant dense<0.000000e+00> : vector<8x128xf32>
    %7 = tpu.matmul %3, %6, %cst {dimension_numbers = #tpu.dot_dimension_numbers<[1], [0], [0], [1], [0, 0, 1, 1], [], []>} : vector<8x256xf32>, vector<256x128xf32>, vector<8x128xf32> -> vector<8x128xf32>
    %c0_5 = arith.constant 0 : index
    %c0_6 = arith.constant 0 : index
    %c0_7 = arith.constant 0 : index
    %8 = vector.load %arg5[%c0_5, %c0_6, %c0_7] : memref<1x1x128xf32, #tpu.memory_space<vmem>>, vector<1x1x128xf32>
    %9 = vector.shape_cast %8 : vector<1x1x128xf32> to vector<1x128xf32>
    %10 = vector.broadcast %9 : vector<1x128xf32> to vector<8x128xf32>
    %11 = arith.addf %7, %10 : vector<8x128xf32>
    %c0_8 = arith.constant 0 : index
    %c0_9 = arith.constant 0 : index
    %c0_10 = arith.constant 0 : index
    %12 = vector.load %arg6[%c0_8, %c0_9, %c0_10] : memref<1x128x128xf32, #tpu.memory_space<vmem>>, vector<1x128x128xf32>
    %13 = vector.shape_cast %12 : vector<1x128x128xf32> to vector<128x128xf32>
    %cst_11 = arith.constant dense<0.000000e+00> : vector<8x128xf32>
    %14 = tpu.matmul %4, %13, %cst_11 {dimension_numbers = #tpu.dot_dimension_numbers<[1], [0], [0], [1], [0, 0, 1, 1], [], []>} : vector<8x128xf32>, vector<128x128xf32>, vector<8x128xf32> -> vector<8x128xf32>
    %c0_12 = arith.constant 0 : index
    %c0_13 = arith.constant 0 : index
    %c0_14 = arith.constant 0 : index
    %15 = vector.load %arg7[%c0_12, %c0_13, %c0_14] : memref<1x1x128xf32, #tpu.memory_space<vmem>>, vector<1x1x128xf32>
    %16 = vector.shape_cast %15 : vector<1x1x128xf32> to vector<1x128xf32>
    %17 = vector.broadcast %16 : vector<1x128xf32> to vector<8x128xf32>
    %18 = arith.addf %14, %17 : vector<8x128xf32>
    %cst_15 = arith.constant 0.000000e+00 : f32
    %19 = vector.broadcast %cst_15 : f32 to vector<8x128xf32>
    %20 = arith.maximumf %11, %19 : vector<8x128xf32>
    %cst_16 = arith.constant 0.000000e+00 : f32
    %21 = vector.broadcast %cst_16 : f32 to vector<8x128xf32>
    %22 = arith.maximumf %18, %21 : vector<8x128xf32>
    %c0_17 = arith.constant 0 : index
    %c0_18 = arith.constant 0 : index
    %23 = vector.load %arg10[%c0_17, %c0_18] : memref<8x256xf32, #tpu.memory_space<vmem>>, vector<8x128xf32>
    tpu.vector_store %arg10[%c0_17, %c0_18], %20 {strides = array<i32>} : memref<8x256xf32, #tpu.memory_space<vmem>>, vector<8x128xf32>,
    %c0_19 = arith.constant 0 : index
    %c128 = arith.constant 128 : index
    %24 = vector.load %arg10[%c0_19, %c128] : memref<8x256xf32, #tpu.memory_space<vmem>>, vector<8x128xf32>
    tpu.vector_store %arg10[%c0_19, %c128], %22 {strides = array<i32>} : memref<8x256xf32, #tpu.memory_space<vmem>>, vector<8x128xf32>,
    %c2_i32 = arith.constant 2 : i32
    %25 = arith.cmpi eq, %arg1, %c2_i32 : i32
    %26 = arith.extui %25 : i1 to i32
    %c0_i32_20 = arith.constant 0 : i32
    %27 = arith.cmpi ne, %26, %c0_i32_20 : i32
    scf.if %27 {
      %c0_21 = arith.constant 0 : index
      %c0_22 = arith.constant 0 : index
      %28 = vector.load %arg8[%c0_21, %c0_22] : memref<8x128xf32, #tpu.memory_space<vmem>>, vector<8x128xf32>
      tpu.vector_store %arg8[%c0_21, %c0_22], %20 {strides = array<i32>} : memref<8x128xf32, #tpu.memory_space<vmem>>, vector<8x128xf32>,
      %c0_23 = arith.constant 0 : index
      %c0_24 = arith.constant 0 : index
      %29 = vector.load %arg9[%c0_23, %c0_24] : memref<8x128xf32, #tpu.memory_space<vmem>>, vector<8x128xf32>
      tpu.vector_store %arg9[%c0_23, %c0_24], %22 {strides = array<i32>} : memref<8x128xf32, #tpu.memory_space<vmem>>, vector<8x128xf32>,
    } else {
    }
    return
  }
  func.func @transform_0(%arg0: i32, %arg1: i32) -> (i32, i32) {
    %c0_i32 = arith.constant 0 : i32
    %c0_i32_0 = arith.constant 0 : i32
    return %arg0, %c0_i32 : i32, i32
  }
  func.func @transform_1(%arg0: i32, %arg1: i32) -> (i32, i32) {
    %c0_i32 = arith.constant 0 : i32
    %c0_i32_0 = arith.constant 0 : i32
    return %arg0, %c0_i32 : i32, i32
  }
  func.func @transform_2(%arg0: i32, %arg1: i32) -> (i32, i32, i32) {
    %c0_i32 = arith.constant 0 : i32
    %c0_i32_0 = arith.constant 0 : i32
    %c0_i32_1 = arith.constant 0 : i32
    return %arg1, %c0_i32, %c0_i32_0 : i32, i32, i32
  }
  func.func @transform_3(%arg0: i32, %arg1: i32) -> (i32, i32, i32) {
    %c0_i32 = arith.constant 0 : i32
    %c0_i32_0 = arith.constant 0 : i32
    %c0_i32_1 = arith.constant 0 : i32
    return %arg1, %c0_i32, %c0_i32_0 : i32, i32, i32
  }
  func.func @transform_4(%arg0: i32, %arg1: i32) -> (i32, i32, i32) {
    %c0_i32 = arith.constant 0 : i32
    %c0_i32_0 = arith.constant 0 : i32
    %c0_i32_1 = arith.constant 0 : i32
    return %arg1, %c0_i32, %c0_i32_0 : i32, i32, i32
  }
  func.func @transform_5(%arg0: i32, %arg1: i32) -> (i32, i32, i32) {
    %c0_i32 = arith.constant 0 : i32
    %c0_i32_0 = arith.constant 0 : i32
    %c0_i32_1 = arith.constant 0 : i32
    return %arg1, %c0_i32, %c0_i32_0 : i32, i32, i32
  }
  func.func @transform_6(%arg0: i32, %arg1: i32) -> (i32, i32) {
    %c0_i32 = arith.constant 0 : i32
    %c0_i32_0 = arith.constant 0 : i32
    return %arg0, %c0_i32 : i32, i32
  }
  func.func @transform_7(%arg0: i32, %arg1: i32) -> (i32, i32) {
    %c0_i32 = arith.constant 0 : i32
    %c0_i32_0 = arith.constant 0 : i32
    return %arg0, %c0_i32 : i32, i32
  }
}

</mosaic_0001>

<bundles_post_ra>
// kernel: tpu_custom_call.1
= control target key start
LH: loop header
LB: loop body
LE: loop exit
PB: predicated region body
PF: predicated region fallthrough
CT: control target
= control target key end

     0   :  { %s2074_s0 = inlined_call_operand.hbm [shape: f32[16,128], index: 0, kind: input, shape index: {}]   ;;  %s2075_s1 = inlined_call_operand.hbm [shape: f32[16,128], index: 1, kind: input, shape index: {}]   ;;  %s2076_s2 = inlined_call_operand.hbm [shape: f32[3,256,128], index: 2, kind: input, shape index: {}]   ;;  %s2077_s3 = inlined_call_operand.vmem [shape: f32[3,1,128], index: 3, kind: input, shape index: {}]   ;;  %s2078_s4 = inlined_call_operand.hbm [shape: f32[3,128,128], index: 4, kind: input, shape index: {}]   ;;  %s2079_s5 = inlined_call_operand.vmem [shape: f32[3,1,128], index: 5, kind: input, shape index: {}]   ;;  %s2080_s6 = inlined_call_operand.hbm [shape: f32[16,128], index: 6, kind: output, shape index: {0}]   ;;  %s2081_s7 = inlined_call_operand.hbm [shape: f32[16,128], index: 7, kind: output, shape index: {1}]  }
   0x1   :  { %2100 = sst [smem:[#allocation30_spill]] %s2075_s1 }
   0x2   :  { %2101 = sst [smem:[#allocation31_spill]] %s2080_s6 }
   0x3   :  { %2102 = sst [smem:[#allocation32_spill]] %s2081_s7 }
   0x4   :  { %13 = vsyncpa [#allocation4], 0 }
   0x5   :  { %15 = vsyncpa [#allocation4 + $0x1], 0 }
   0x6   :  { %16 = vsyncpa [#allocation7], 0 }
   0x7   :  { %18 = vsyncpa [#allocation7 + $0x1], 0 }
   0x8   :  { %19 = vsyncpa [#allocation10], 0 }
   0x9   :  { %21 = vsyncpa [#allocation10 + $0x1], 0 }
   0xa   :  { %22 = vsyncpa [#allocation5], 0 }
   0xb   :  { %24 = vsyncpa [#allocation5 + $0x1], 0 }
   0xc   :  { %25 = vsyncpa [#allocation13], 0 }
   0xd   :  { %27 = vsyncpa [#allocation13 + $0x1], 0  ;;  %s1552_s24 = smov 0   ;;  %s1554_s25 = smov 0  }
   0xe   :  { %s1556_s26 = smov 0   ;;  %s1558_s27 = smov 0  }
   0xf   :  { %s1560_s28 = smov 0   ;;  %s1562_s29 = smov 0  }
  0x10   :  { %s1564_s30 = smov 0   ;;  %s1566_s8 = smov 0  }
  0x11   :  { %s1568_s9 = smov 0   ;;  %s1570_s10 = smov 0  }
  0x12   :  { %s1572_s11 = smov 0  }
  0x13 LB: > { %2103 = sst [smem:[#allocation20_spill]] %s1471_s27  ;;  %s1608_s12 = sadd.s32 4294967295, %s1499_s11   ;;  %s1499_s11 = sphi %s1572_s11, %s33_s11   ;;  %s1495_s10 = sphi %s1570_s10, %s2143_s10   ;;  %s1491_s9 = sphi %s1568_s9, %s2151_s9   ;;  %s1487_s8 = sphi %s1566_s8, %s2141_s8   ;;  %s1483_s30 = sphi %s1564_s30, %s2150_s30   ;;  %s1479_s29 = sphi %s1562_s29, %s2149_s29   ;;  %s1475_s28 = sphi %s1560_s28, %s2148_s28   ;;  %s1471_s27 = sphi %s1558_s27, %s2147_s27   ;;  %s1467_s26 = sphi %s1556_s26, %s2146_s26   ;;  %s1463_s25 = sphi %s1554_s25, %s2145_s25   ;;  %s1459_s24 = sphi %s1552_s24, %s2144_s24  }
  0x14   : > { %2104 = sst [smem:[#allocation21_spill]] %s1487_s8  ;;  %s911_s13 = sadd.s32 4294967294, %s1499_s11  }
  0x15   : > { %2105 = sst [smem:[#allocation22_spill]] %s1495_s10  ;;  %s42_s14 = sadd.s32 1, %s1491_s9 }
  0x16   : > { %2106 = sst [smem:[#allocation23_spill]] %s1499_s11  ;;  %s45_s15 = sadd.s32 1, %s1495_s10 }
  0x17   : > { %p43_p0 = scmp.ge.s32.totalorder %s42_s14, 3  ;;  %s52_s16 = sadd.s32 1, %s1479_s29 }
  0x18   : > { %p59_p1 = scmp.ne.s32.totalorder %s1479_s29, %s1475_s28  ;;  %p60_p2 = scmp.eq.s32.totalorder %s1499_s11, 0 }
  0x19   : > { %s2153_s14 = smov (%p43_p0, %s42_s14), 0  ;;  %s2155_s15 = smov (!%p43_p0, %s45_s15), %s1495_s10 }
  0x1a   : > { %2107 = sst [smem:[#allocation24_spill]] %s2153_s14  ;;  %p1625_p3 = por %p60_p2, %p59_p1 }
  0x1b   : > { %p2083_p4 = scmp.ne.s32.totalorder %s1475_s28, %s1471_s27  ;;  %p47_p5 = scmp.ge.s32.totalorder %s2155_s15, 2 }
  0x1c   : > { %p66_p6 = scmp.eq.s32.totalorder %s1608_s12, 0  ;;  %s101_s18 = ssub.s32 %s1491_s9, %s2153_s14 }
  0x1d   : > { %s104_s19 = sadd.s32 1, %s1467_s26  ;;  %s2157_s15 = smov (%p47_p5, %s2155_s15), 0 }
  0x1e   : > { %2109 = sst [smem:[#allocation25_spill]] %s2157_s15  ;;  %p1642_p7 = por %p66_p6, %p2083_p4 }
  0x1f   : > { %p102_p8 = scmp.eq.s32.totalorder %s101_s18, 0  ;;  %s49_s21 = ssub.s32 %s1495_s10, %s2157_s15 }
  0x20   : > { %s2110_s20 = scalar_select %p1642_p7, 1, 0 }
  0x21   : > { %p111_p9 = scmp.ne.s32.totalorder %s1467_s26, %s1463_s25  ;;  %p50_p10 = scmp.eq.s32.totalorder %s49_s21, 0 }
  0x22   : > { %p117_p11 = scmp.ne.s32.totalorder %s1463_s25, %s1459_s24  ;;  %p219_p0 = scmp.eq.s32.totalorder %s1608_s12, 5 }
  0x23   : > { %s1653_s22 = scalar_select %p102_p8, %s1467_s26, %s104_s19  }
  0x24   : > { %s1656_s23 = scalar_select %p50_p10, %s1479_s29, %s52_s16  }
  0x25   : > { %2111 = sst [smem:[#allocation26_spill]] %s1653_s22  ;;  %p1660_p12 = por %p111_p9, %p60_p2 }
  0x26   : > { %2112 = sst [smem:[#allocation27_spill]] %s1656_s23  ;;  %p1666_p13 = por %p117_p11, %p66_p6 }
  0x27   : > { %p225_p5 = scmp.eq.s32.totalorder %s911_s13, 5  ;;  %p1118_p4 = scmp.lt.s32.totalorder %s1499_s11, 6 }
  0x28   : > { %s2114_s18 = scalar_select %p1666_p13, 1, 0 }
  0x29   : > { %p1675_p7 = por %p219_p0, %p59_p1  ;;  %p2117_p8 = scmp.ne.s32.totalorder %s1475_s28, %s1471_s27 }
  0x2a   : > { %s2088_s19 = sand.u32 1, %s1479_s29   ;;  %s2093_s21 = sshll.u32 %s1495_s10, 7 }
  0x2b   : > { %s2115_s24 = scalar_select %p1675_p7, 1, 0 }
  0x2c   : > { %p1682_p10 = por %p225_p5, %p2117_p8  ;;  %s1690_s15 = sshll.u32 %s2088_s19, 3 }
  0x2d   : > { %2116 = sst [smem:[#allocation28_spill]] %s2115_s24  ;;  %p1694_p2 = pnand %p1118_p4, %p1625_p3 }
  0x2e   : > { %s2118_s16 = scalar_select %p1682_p10, 1, 0 }
  0x2f   : > { %s289_s23 = sand.u32 1, %s1499_s11   ;;  %s2121_s1 = sld [smem:[#allocation30_spill]] }
  0x30   : > { %2119 = sst [smem:[#allocation29_spill]] %s2118_s16  ;;  %s293_s19 = scalar_lea.vmem [#allocation6], %s1690_s15 }
  0x31   : > { %s300_s17 = sshll.u32 %s293_s19, 4  ;;  %p1711_p1 = pnand %p1118_p4, %p1660_p12  ;;  %s1707_s17 = int_to_ptr.vmem [resolvable:$true] %s300_s17 }
  0x32   : > { %s1715_s6 = scalar_lea.sflag [#allocation7], %s289_s23  ;;  %p1215_p6 = pneg %p1694_p2 }
  0x35   : > { %s1704_s7 = scalar_lea.hbm %s2121_s1, %s2093_s21  ;;  %s1218_s19 = scalar_lea.hbm %s2121_s1, 256 }
  0x36   : > { %s1213_s24 = scalar_lea.hbm %s1704_s7, 128  ;;  %p1219_p4 = scmp.lt.u32.totalorder %s1704_s7, %s2121_s1 }
  0x37   : > { %p1214_p3 = scmp.ne.s32.totalorder %s1704_s7, %s1213_s24  ;;  %p1220_p12 = scmp.lt.u32.totalorder %s1218_s19, %s1213_s24 }
  0x38   : > { %p1222_p5 = scmp.lt.u32.totalorder %s1213_s24, %s1704_s7 }
  0x39   : > { %p1216_p9 = pnand %p1215_p6, %p1214_p3  ;;  %p1221_p0 = por %p1220_p12, %p1219_p4 }
  0x3b   : > { %p1217_p11 = pneg %p1216_p9  ;;  %p1223_p8 = por %p1222_p5, %p1221_p0 }
  0x3d   : > { %p1224_p10 = pnand %p1223_p8, %p1217_p11 }
  0x3f   : > { %1227 = shalt.err (!%p1224_p10)
}
  0x40   : > { %s1228_s23 = scalar_lea.vmem %s1707_s17, 128  ;;  %s1501_s27 = smov [#allocation6]  }
  0x41   : > { %p1229_p3 = scmp.ne.s32.totalorder %s1707_s17, %s1228_s23  ;;  %s1233_s22 = sshll.u32 %s1501_s27, 4  ;;  %s1234_s22 = int_to_ptr.vmem [resolvable:$false] %s1233_s22 }
  0x42   : > { %s1235_s21 = scalar_lea.vmem %s1234_s22, 256  ;;  %p1236_p13 = scmp.lt.s32.totalorder %s1707_s17, %s1234_s22 }
  0x43   : > { %p1231_p9 = pnand %p1229_p3, %p1215_p6  ;;  %p1237_p4 = scmp.lt.s32.totalorder %s1235_s21, %s1228_s23 }
  0x45   : > { %p1232_p7 = pneg %p1231_p9  ;;  %p1238_p12 = por %p1237_p4, %p1236_p13 }
  0x47   : > { %p1239_p0 = pnand %p1238_p12, %p1232_p7 }
  0x49   : > { %1242 = shalt.err (!%p1239_p0)
}
  0x4a   : > { %1104 = dma.hbm_to_vmem [thread:$0]  (!%p1694_p2), %s1704_s7, 128, %s1707_s17, %s1715_s6  }
  0x4b   : > { %p924_p10 = scmp.ge.s32.totalorder %s1499_s11, 1  ;;  %p359_p11 = scmp.lt.s32.totalorder %s1499_s11, 7 }
  0x4c   : > { %s2124_s19 = sshll.u32 %s1495_s10, 7  ;;  %s275_s22 = scalar_lea.vmem [#allocation3], %s1690_s15 }
  0x4d   : > { %p1745_p5 = pnand %p924_p10, %p359_p11  ;;  %s1754_s27 = scalar_lea.hbm %s2074_s0, %s2124_s19 }
  0x4e   : > { %s282_s21 = sshll.u32 %s275_s22, 4  ;;  %s1760_s7 = sand.u32 1, %s1467_s26   ;;  %s1757_s21 = int_to_ptr.vmem [resolvable:$true] %s282_s21 }
  0x4f   : > { %s2123_s24 = scalar_select %p1745_p5, 1, 0 }
  0x50   : > { %s2125_s17 = sand.u32 1, %s1479_s29   ;;  %s1243_s11 = scalar_lea.hbm %s1754_s27, 128 }
  0x51   : > { %s272_s1 = scalar_lea.sflag [#allocation4], %s2125_s17  ;;  %p1244_p7 = scmp.ne.s32.totalorder %s1754_s27, %s1243_s11 }
  0x52   : > { %s1248_s23 = scalar_lea.hbm %s2074_s0, 256  ;;  %p1249_p3 = scmp.lt.u32.totalorder %s1754_s27, %s2074_s0 }
  0x53   : > { %p1246_p13 = pnand %p1244_p7, %p1215_p6  ;;  %p1250_p9 = scmp.lt.u32.totalorder %s1248_s23, %s1243_s11 }
  0x54   : > { %p1252_p12 = scmp.lt.u32.totalorder %s1243_s11, %s1754_s27 }
  0x55   : > { %p1247_p8 = pneg %p1246_p13  ;;  %p1251_p4 = por %p1250_p9, %p1249_p3 }
  0x57   : > { %p1253_p0 = por %p1252_p12, %p1251_p4 }
  0x59   : > { %p1254_p10 = pnand %p1253_p0, %p1247_p8 }
  0x5b   : > { %1257 = shalt.err (!%p1254_p10)
}
  0x5c   : > { %s1258_s15 = scalar_lea.vmem %s1757_s21, 128  ;;  %s1502_s22 = smov [#allocation3]  }
  0x5d   : > { %p1259_p11 = scmp.ne.s32.totalorder %s1757_s21, %s1258_s15  ;;  %s1263_s17 = sshll.u32 %s1502_s22, 4  ;;  %s1264_s17 = int_to_ptr.vmem [resolvable:$false] %s1263_s17 }
  0x5e   : > { %s1265_s8 = scalar_lea.vmem %s1264_s17, 256  ;;  %p1266_p5 = scmp.lt.s32.totalorder %s1757_s21, %s1264_s17 }
  0x5f   : > { %p1261_p7 = pnand %p1259_p11, %p1215_p6  ;;  %p1267_p3 = scmp.lt.s32.totalorder %s1265_s8, %s1258_s15 }
  0x61   : > { %p1262_p13 = pneg %p1261_p7  ;;  %p1268_p9 = por %p1267_p3, %p1266_p5 }
  0x63   : > { %p1269_p4 = pnand %p1268_p9, %p1262_p13 }
  0x65   : > { %1272 = shalt.err (!%p1269_p4)
}
  0x66   : > { %1101 = dma.hbm_to_vmem [thread:$0]  (!%p1694_p2), %s1754_s27, 128, %s1757_s21, %s272_s1  }
  0x67   : > { %s918_s10 = sshll.u32 %s1760_s7, 8  ;;  %s941_s11 = sshll.u32 %s1491_s9, 12 }
  0x68   : > { %s1792_s23 = scalar_lea.hbm %s2076_s2, %s941_s11  ;;  %s311_s15 = scalar_lea.vmem [#allocation8], %s918_s10 }
  0x69   : > { %s318_s13 = sshll.u32 %s311_s15, 4  ;;  %s1273_s22 = scalar_lea.hbm %s1792_s23, 4096  ;;  %s1794_s13 = int_to_ptr.vmem [resolvable:$true] %s318_s13 }
  0x6a   : > { %p1274_p6 = scmp.ne.s32.totalorder %s1792_s23, %s1273_s22  ;;  %p1275_p5 = pneg %p1711_p1 }
  0x6b   : > { %s1278_s21 = scalar_lea.hbm %s2076_s2, 12288  ;;  %p1279_p12 = scmp.lt.u32.totalorder %s1792_s23, %s2076_s2 }
  0x6c   : > { %p1276_p2 = pnand %p1275_p5, %p1274_p6  ;;  %p1280_p0 = scmp.lt.u32.totalorder %s1278_s21, %s1273_s22 }
  0x6d   : > { %p1282_p11 = scmp.lt.u32.totalorder %s1273_s22, %s1792_s23 }
  0x6e   : > { %p1277_p8 = pneg %p1276_p2  ;;  %p1281_p10 = por %p1280_p0, %p1279_p12 }
  0x70   : > { %p1283_p7 = por %p1282_p11, %p1281_p10 }
  0x72   : > { %p1284_p13 = pnand %p1283_p7, %p1277_p8 }
  0x74   : > { %1287 = shalt.err (!%p1284_p13)
}
  0x75   : > { %s1288_s10 = scalar_lea.vmem %s1794_s13, 4096  ;;  %s1503_s11 = smov [#allocation8]  }
  0x76   : > { %p1289_p3 = scmp.ne.s32.totalorder %s1794_s13, %s1288_s10  ;;  %s1293_s19 = sshll.u32 %s1503_s11, 4  ;;  %s1294_s19 = int_to_ptr.vmem [resolvable:$false] %s1293_s19 }
  0x77   : > { %s1295_s14 = scalar_lea.vmem %s1294_s19, 8192  ;;  %p1296_p6 = scmp.lt.s32.totalorder %s1794_s13, %s1294_s19 }
  0x78   : > { %p1291_p9 = pnand %p1289_p3, %p1275_p5  ;;  %p1297_p2 = scmp.lt.s32.totalorder %s1295_s14, %s1288_s10 }
  0x7a   : > { %p1292_p4 = pneg %p1291_p9  ;;  %p1298_p12 = por %p1297_p2, %p1296_p6 }
  0x7c   : > { %p1299_p0 = pnand %p1298_p12, %p1292_p4 }
  0x7e   : > { %1302 = shalt.err (!%p1299_p0)
}
  0x7f   : > { %s1504_s15 = smov 128   ;;  %s1505_s22 = smov 8  }
  0x80   : > { %1107 = dma.hbm_to_vmem [thread:$0]  (!%p1711_p1), %s1792_s23, 4096, %s1794_s13, %s1715_s6, %s1504_s15, %s1504_s15, %s1505_s22  }
  0x81   : > { %s921_s1 = sshll.u32 %s1760_s7, 7  ;;  %s942_s27 = sshll.u32 %s1491_s9, 11 }
  0x82   : > { %s1830_s8 = scalar_lea.hbm %s2078_s4, %s942_s27  ;;  %s338_s10 = scalar_lea.vmem [#allocation9], %s921_s1 }
  0x83   : > { %s345_s11 = sshll.u32 %s338_s10, 4  ;;  %s335_s19 = scalar_lea.sflag [#allocation10], %s1760_s7  ;;  %s1832_s11 = int_to_ptr.vmem [resolvable:$true] %s345_s11 }
  0x84   : > { %s1303_s14 = scalar_lea.hbm %s1830_s8, 2048  ;;  %s1308_s13 = scalar_lea.hbm %s2078_s4, 6144 }
  0x85   : > { %p1304_p8 = scmp.ne.s32.totalorder %s1830_s8, %s1303_s14  ;;  %p1309_p7 = scmp.lt.u32.totalorder %s1830_s8, %s2078_s4 }
  0x86   : > { %p1310_p13 = scmp.lt.u32.totalorder %s1308_s13, %s1303_s14  ;;  %p1312_p9 = scmp.lt.u32.totalorder %s1303_s14, %s1830_s8 }
  0x87   : > { %p1306_p10 = pnand %p1304_p8, %p1275_p5 }
  0x88   : > { %p1311_p3 = por %p1310_p13, %p1309_p7 }
  0x89   : > { %p1307_p11 = pneg %p1306_p10 }
  0x8a   : > { %p1313_p4 = por %p1312_p9, %p1311_p3 }
  0x8c   : > { %p1314_p6 = pnand %p1313_p4, %p1307_p11 }
  0x8e   : > { %1317 = shalt.err (!%p1314_p6)
}
  0x8f   : > { %s1318_s1 = scalar_lea.vmem %s1832_s11, 2048  ;;  %s1506_s17 = smov [#allocation9]  }
  0x90   : > { %p1319_p2 = scmp.ne.s32.totalorder %s1832_s11, %s1318_s1  ;;  %s1323_s10 = sshll.u32 %s1506_s17, 4  ;;  %s1324_s10 = int_to_ptr.vmem [resolvable:$false] %s1323_s10 }
  0x91   : > { %s1325_s6 = scalar_lea.vmem %s1324_s10, 4096  ;;  %p1326_p8 = scmp.lt.s32.totalorder %s1832_s11, %s1324_s10 }
  0x92   : > { %p1321_p12 = pnand %p1319_p2, %p1275_p5  ;;  %p1327_p10 = scmp.lt.s32.totalorder %s1325_s6, %s1318_s1 }
  0x94   : > { %p1322_p0 = pneg %p1321_p12  ;;  %p1328_p7 = por %p1327_p10, %p1326_p8 }
  0x96   : > { %p1329_p13 = pnand %p1328_p7, %p1322_p0 }
  0x98   : > { %1332 = shalt.err (!%p1329_p13)
}
  0x99   : > { %1110 = dma.hbm_to_vmem [thread:$0]  (!%p1711_p1), %s1830_s8, 2048, %s1832_s11, %s335_s19, %s1504_s15, %s1504_s15, %s1505_s22  }
  0x9a   : > { %p2126_p5 = scmp.ne.s32.totalorder %s2123_s24, 0 }
  0x9b   : > { %s1866_s14 = sand.u32 (!%p2126_p5), 1, %s1475_s28   ;;  %p2127_p11 = scmp.ne.s32.totalorder (!%p2126_p5), %s2110_s20, 0 }
  0x9c   : > { %363 = sbr.rel (%p2126_p5) target bundleno = 490 (0x1ea), region = 44  ;;  %s1869_s23 = sshll.u32 (!%p2126_p5), %s1866_s14, 3 }
  0x9d   : > { %s366_s16 = scalar_lea.sflag (!%p2126_p5), [#allocation4], %s1866_s14  ;;  %s369_s13 = scalar_lea.vmem (!%p2126_p5), [#allocation3], %s1869_s23 }
  0xa3   : > { %1434 = dma.done.wait (%p2127_p11), %s366_s16, 128  }
  0xa4   : > { %1436 = vsyncadd (%p2127_p11), %s366_s16, 4294967168  ;;  %s374_s24 = sand.u32 1, %s1608_s12   ;;  %s378_s15 = scalar_lea.vmem [#allocation6], %s1869_s23 }
  0xa5   : > { %s375_s7 = scalar_lea.sflag [#allocation7], %s374_s24 }
  0xa6   : > { %1438 = dma.done.wait (%p2127_p11), %s375_s7, 128  }
  0xa7   : > { %1440 = vsyncadd (%p2127_p11), %s375_s7, 4294967168  ;;  %s385_s22 = sand.u32 1, %s1463_s25   ;;  %p2128_p1 = scmp.ne.s32.totalorder %s2114_s18, 0 }
  0xa8   : > { %s927_s8 = sshll.u32 %s385_s22, 8 }
  0xa9   : > { %s1884_s11 = scalar_lea.vmem [#allocation8], %s927_s8 }
  0xaa   : > { %1442 = dma.done.wait (%p2128_p1), %s375_s7, 4096  }
  0xab   : > { %1444 = vsyncadd (%p2128_p1), %s375_s7, 4294963200  ;;  %s928_s12 = sshll.u32 %s385_s22, 7  ;;  %s393_s19 = scalar_lea.sflag [#allocation10], %s385_s22 }
  0xac   : > { %s1890_s27 = scalar_lea.vmem [#allocation9], %s928_s12 }
  0xad   : > { %1446 = dma.done.wait (%p2128_p1), %s393_s19, 2048  }
  0xae   : > { %1448 = vsyncadd (%p2128_p1), %s393_s19, 4294965248  ;;  %p453_p3 = scmp.lt.s32.totalorder %s1483_s30, 2  ;;  %s445_s24 = scalar_lea.vmem [#allocation11], %s1869_s23 }
  0xaf   : > { %s452_s18 = scalar_lea.vmem [#allocation12], %s1869_s23  ;;  %p931_p9 = scmp.ne.s32.totalorder %s1483_s30, 0 }
  0xb0   : > { %s1898_s20 = scalar_select %p453_p3, %s1483_s30, 2 }
  0xb1   : > { %462 = sbr.rel (%p931_p9) target bundleno = 184 (0xb8), region = 64  ;;  %v463_v0 = vld [vmem:[%s369_s13] sm:$0xff] (!%p931_p9)  ;;  %v465_v1 = vld [vmem:[%s378_s15] sm:$0xff] (!%p931_p9) }
  0xb2   : > { %s455_s17 = scalar_lea.vmem %s2077_s3, %s1898_s20  ;;  %s458_s16 = scalar_lea.vmem %s2079_s5, %s1898_s20  ;;  %464 = vst [vmem:[#allocation2] sm:$0xff] (!%p931_p9), %v463_v0  ;;  %466 = vst [vmem:[#allocation2 + $0x8] sm:$0xff] (!%p931_p9), %v465_v1 }
  0xb8 PF: > { %v485_v2 = vld [vmem:[%s1884_s11 + $0x80] sm:$0xff]  ;;  %v486_v3 = vld [vmem:[%s1884_s11 + $0x88] sm:$0xff]  ;;  %v1507_v7 = vmov 0.0|0.0   ;;  %vm1508_vm0 = vmmov 0   ;;  %v1509_v10 = vmov 0.0   ;;  %v487_v13 = vld [vmem:[%s1884_s11 + $0x90] sm:$0xff] }
  0xb9   : > { %v469_v4 = vld [vmem:[%s1884_s11] sm:$0xff]  ;;  %v1030_v5 = vpack.c.bf16 %v486_v3, %v485_v2  ;;  %v470_v6 = vld [vmem:[%s1884_s11 + $0x8] sm:$0xff]  ;;  %1062 = vmatprep.subr.bf16.mxu1 %v1507_v7  ;;  %1027 = vmatprep.mubr.msk.f32.mxu1 %vm1508_vm0, %v1509_v10  ;;  %v488_v14 = vld [vmem:[%s1884_s11 + $0x98] sm:$0xff]  ;;  %p934_p4 = scmp.ne.s32.totalorder %s1483_s30, 2 }
  0xba   : > { %v578_v8 = vld [vmem:[%s1890_s27] sm:$0xff]  ;;  %v579_v9 = vld [vmem:[%s1890_s27 + $0x8] sm:$0xff]  ;;  %v1032_v11 = vpack.c.bf16 %v470_v6, %v469_v4  ;;  %v471_v15 = vld [vmem:[%s1884_s11 + $0x10] sm:$0xff]  ;;  %v1034_v16 = vpack.c.bf16 %v488_v14, %v487_v13 }
  0xbb   : > { %v1063_v12 = vpack.c.bf16 %v579_v9, %v578_v8  ;;  %1031 = vmatprep.subr.bf16.mxu0 %v1030_v5  ;;  %v472_v17 = vld [vmem:[%s1884_s11 + $0x18] sm:$0xff]  ;;  %v580_v18 = vld [vmem:[%s1890_s27 + $0x10] sm:$0xff]  ;;  %v489_v22 = vld [vmem:[%s1884_s11 + $0xa0] sm:$0xff] }
  0xbc   : > { %v581_v19 = vld [vmem:[%s1890_s27 + $0x18] sm:$0xff]  ;;  %1033 = vmatpush3.bf16.msra.mxu0 %v1032_v11  ;;  %v1036_v20 = vpack.c.bf16 %v472_v17, %v471_v15  ;;  %v490_v23 = vld [vmem:[%s1884_s11 + $0xa8] sm:$0xff]  ;;  %v473_v24 = vld [vmem:[%s1884_s11 + $0x20] sm:$0xff] }
  0xbd   : > { %1064 = vmatpush3.bf16.msra.mxu1 %v1063_v12  ;;  %v1066_v21 = vpack.c.bf16 %v581_v19, %v580_v18  ;;  %1035 = vmatprep.subr.bf16.mxu0 %v1034_v16  ;;  %v1038_v25 = vpack.c.bf16 %v490_v23, %v489_v22  ;;  %v474_v26 = vld [vmem:[%s1884_s11 + $0x28] sm:$0xff]  ;;  %v582_v27 = vld [vmem:[%s1890_s27 + $0x20] sm:$0xff]  ;;  %v491_v29 = vld [vmem:[%s1884_s11 + $0xb0] sm:$0xff] }
  0xbe   : > { %1065 = vmatprep.subr.bf16.mxu1 %v1507_v7  ;;  %v583_v28 = vld [vmem:[%s1890_s27 + $0x28] sm:$0xff]  ;;  %v492_v30 = vld [vmem:[%s1884_s11 + $0xb8] sm:$0xff]  ;;  %v1040_v31 = vpack.c.bf16 %v474_v26, %v473_v24  ;;  %v475_v33 = vld [vmem:[%s1884_s11 + $0x30] sm:$0xff] }
  0xbf   : > { %v1069_v32 = vpack.c.bf16 %v583_v28, %v582_v27  ;;  %v1042_v34 = vpack.c.bf16 %v492_v30, %v491_v29  ;;  %v476_v35 = vld [vmem:[%s1884_s11 + $0x38] sm:$0xff]  ;;  %v584_v36 = vld [vmem:[%s1890_s27 + $0x30] sm:$0xff]  ;;  %v493_v38 = vld [vmem:[%s1884_s11 + $0xc0] sm:$0xff] }
  0xc0   : > { %1037 = vmatpush3.bf16.msra.mxu0 %v1036_v20  ;;  %v585_v37 = vld [vmem:[%s1890_s27 + $0x38] sm:$0xff]  ;;  %v494_v39 = vld [vmem:[%s1884_s11 + $0xc8] sm:$0xff]  ;;  %v1044_v40 = vpack.c.bf16 %v476_v35, %v475_v33  ;;  %v477_v42 = vld [vmem:[%s1884_s11 + $0x40] sm:$0xff] }
  0xc1   : > { %1067 = vmatpush3.bf16.msra.mxu1 %v1066_v21  ;;  %1039 = vmatprep.subr.bf16.mxu0 %v1038_v25  ;;  %v1072_v41 = vpack.c.bf16 %v585_v37, %v584_v36  ;;  %v1046_v43 = vpack.c.bf16 %v494_v39, %v493_v38  ;;  %v478_v44 = vld [vmem:[%s1884_s11 + $0x48] sm:$0xff]  ;;  %v586_v45 = vld [vmem:[%s1890_s27 + $0x40] sm:$0xff]  ;;  %v495_v47 = vld [vmem:[%s1884_s11 + $0xd0] sm:$0xff] }
  0xc2   : > { %1068 = vmatprep.subr.bf16.mxu1 %v1507_v7  ;;  %v587_v46 = vld [vmem:[%s1890_s27 + $0x48] sm:$0xff]  ;;  %v496_v48 = vld [vmem:[%s1884_s11 + $0xd8] sm:$0xff]  ;;  %v1048_v50 = vpack.c.bf16 %v478_v44, %v477_v42  ;;  %v479_v52 = vld [vmem:[%s1884_s11 + $0x50] sm:$0xff] }
  0xc3   : > { %v468_v49 = vld [vmem:[#allocation2 + $0x8] sm:$0xff]  ;;  %v1075_v51 = vpack.c.bf16 %v587_v46, %v586_v45  ;;  %v1050_v53 = vpack.c.bf16 %v496_v48, %v495_v47  ;;  %v588_v55 = vld [vmem:[%s1890_s27 + $0x50] sm:$0xff]  ;;  %v497_v57 = vld [vmem:[%s1884_s11 + $0xe0] sm:$0xff] }
  0xc4   : > { %1041 = vmatpush3.bf16.msra.mxu0 %v1040_v31  ;;  %v480_v54 = vld [vmem:[%s1884_s11 + $0x58] sm:$0xff]  ;;  %v498_v58 = vld [vmem:[%s1884_s11 + $0xe8] sm:$0xff]  ;;  %572 = vmatprep.mubr.f32.mxu0 %v468_v49  ;;  %v481_v61 = vld [vmem:[%s1884_s11 + $0x60] sm:$0xff] }
  0xc5   : > { %1070 = vmatpush3.bf16.msra.mxu1 %v1069_v32  ;;  %1043 = vmatprep.subr.bf16.mxu0 %v1042_v34  ;;  %v589_v56 = vld [vmem:[%s1890_s27 + $0x58] sm:$0xff]  ;;  %v1052_v59 = vpack.c.bf16 %v480_v54, %v479_v52  ;;  %v1054_v62 = vpack.c.bf16 %v498_v58, %v497_v57  ;;  %v482_v63 = vld [vmem:[%s1884_s11 + $0x68] sm:$0xff]  ;;  %v590_v0 = vld [vmem:[%s1890_s27 + $0x60] sm:$0xff] }
  0xc6   : > { %1071 = vmatprep.subr.bf16.mxu1 %v1507_v7  ;;  %v1078_v60 = vpack.c.bf16 %v589_v56, %v588_v55  ;;  %v591_v1 = vld [vmem:[%s1890_s27 + $0x68] sm:$0xff]  ;;  %v499_v2 = vld [vmem:[%s1884_s11 + $0xf0] sm:$0xff]  ;;  %v500_v3 = vld [vmem:[%s1884_s11 + $0xf8] sm:$0xff]  ;;  %v1056_v4 = vpack.c.bf16 %v482_v63, %v481_v61 }
  0xc7   : > { %v1081_v5 = vpack.c.bf16 %v591_v1, %v590_v0  ;;  %v483_v6 = vld [vmem:[%s1884_s11 + $0x70] sm:$0xff]  ;;  %v1058_v8 = vpack.c.bf16 %v500_v3, %v499_v2  ;;  %v484_v9 = vld [vmem:[%s1884_s11 + $0x78] sm:$0xff] }
  0xc8   : > { %1045 = vmatpush3.bf16.msra.mxu0 %v1044_v40  ;;  %v592_v10 = vld [vmem:[%s1890_s27 + $0x70] sm:$0xff]  ;;  %v593_v11 = vld [vmem:[%s1890_s27 + $0x78] sm:$0xff]  ;;  %v1060_v12 = vpack.c.bf16 %v484_v9, %v483_v6 }
  0xc9   : > { %1073 = vmatpush3.bf16.msra.mxu1 %v1072_v41  ;;  %1047 = vmatprep.subr.bf16.mxu0 %v1046_v43  ;;  %v1084_v13 = vpack.c.bf16 %v593_v11, %v592_v10  ;;  %v467_v14 = vld [vmem:[#allocation2] sm:$0xff] }
  0xca   : > { %1074 = vmatprep.subr.bf16.mxu1 %v1507_v7  ;;  %v933_v15 = vld [vmem:[%s458_s16] ss:$0 sm:$0xff] }
  0xcb   : > { %v932_v18 = vld [vmem:[%s455_s17] ss:$0 sm:$0xff] }
  0xcc   : > { %1049 = vmatpush3.bf16.msra.mxu0 %v1048_v50 }
  0xcd   : > { %1076 = vmatpush3.bf16.msra.mxu1 %v1075_v51  ;;  %1051 = vmatprep.subr.bf16.mxu0 %v1050_v53 }
  0xce   : > { %1077 = vmatprep.subr.bf16.mxu1 %v1507_v7 }
  0xd0   : > { %1053 = vmatpush3.bf16.msra.mxu0 %v1052_v59 }
  0xd1   : > { %1079 = vmatpush3.bf16.msra.mxu1 %v1078_v60  ;;  %1055 = vmatprep.subr.bf16.mxu0 %v1054_v62 }
  0xd2   : > { %1080 = vmatprep.subr.bf16.mxu1 %v1507_v7 }
  0xd4   : > { %1057 = vmatpush3.bf16.msra.mxu0 %v1056_v4 }
  0xd5   : > { %1082 = vmatpush3.bf16.msra.mxu1 %v1081_v5  ;;  %1059 = vmatprep.subr.bf16.mxu0 %v1058_v8 }
  0xd6   : > { %1083 = vmatprep.subr.bf16.mxu1 %v1507_v7 }
  0xd8   : > { %1061 = vmatpush3.bf16.msra.mxu0 %v1060_v12 }
  0xd9   : > { %1085 = vmatpush3.bf16.msra.mxu1 %v1084_v13 }
  0xdb   : > { %573 = vmatmul.mubr.f32.vlgmr.msra.gmra.mrb[0].mxu0 %v467_v14 }
  0xdc   : > { %1028 = vmatmul.mubr.f32.vlgmr.msra.gmra.mrb[0].mxu1 %v468_v49 }
 0x1ae   : > { %v975_v16 = vpop.f32.mrb[0].mxu0 }
 0x1af   : > { %v667_v17 = vpop.f32.mrb[0].mxu1  ;;  %v976_v19 = vpop.f32.mrb[1].mxu0 }
 0x1b0   : > { %v668_v20 = vadd.f32 %v933_v15, %v667_v17  ;;  %v1029_v7 = vpop.f32.mrb[1].mxu1  ;;  %v977_v21 = vadd.f32 %v976_v19, %v975_v16  ;;  %678 = sbr.rel (%p934_p4) target bundleno = 439 (0x1b7), region = 68 }
 0x1b2   : > { %v672_v22 = vmax.f32 %v668_v20, 0.0  ;;  %v575_v23 = vadd.f32 %v977_v21, %v932_v18 }
 0x1b4   : > { %674 = vst [vmem:[#allocation2 + $0x8] sm:$0xff] %v672_v22  ;;  %v671_v24 = vmax.f32 %v575_v23, 0.0  ;;  %680 = vst [vmem:[%s452_s18] sm:$0xff] (!%p934_p4), %v672_v22 }
 0x1b6   : > { %673 = vst [vmem:[#allocation2] sm:$0xff] %v671_v24  ;;  %679 = vst [vmem:[%s445_s24] sm:$0xff] (!%p934_p4), %v671_v24 }
 0x1b7 PF: > { %s2129_s8 = sld [smem:[#allocation21_spill]]  ;;  %s2130_s11 = sld [smem:[#allocation28_spill]] }
 0x1b8   : > { %s2131_s20 = sld [smem:[#allocation31_spill]]  ;;  %s700_s30 = sshll.u32 %s445_s24, 4  ;;  %s701_s30 = int_to_ptr.vmem [resolvable:$true] %s700_s30 }
 0x1b9   : > { %s682_s1 = scalar_lea.sflag [#allocation5], %s1866_s14  ;;  %s1333_s17 = scalar_lea.vmem %s701_s30, 128 }
 0x1ba   : > { %p1334_p6 = scmp.ne.s32.totalorder %s701_s30, %s1333_s17  ;;  %s1510_s10 = smov [#allocation11]  }
 0x1bb   : > { %s1337_s6 = sshll.u32 %s1510_s10, 4  ;;  %s1338_s6 = int_to_ptr.vmem [resolvable:$false] %s1337_s6 }
 0x1bc   : > { %s1339_s16 = scalar_lea.vmem %s1338_s6, 256  ;;  %p1340_p8 = scmp.lt.s32.totalorder %s701_s30, %s1338_s6 }
 0x1bd   : > { %s937_s12 = sshll.u32 %s2129_s8, 7  ;;  %p2132_p2 = scmp.ne.s32.totalorder %s2130_s11, 0 }
 0x1be   : > { %s1988_s21 = scalar_lea.hbm %s2131_s20, %s937_s12  ;;  %p1341_p10 = scmp.lt.s32.totalorder %s1339_s16, %s1333_s17 }
 0x1bf   : > { %p1335_p12 = pnand %p1334_p6, %p2132_p2 }
 0x1c0   : > { %p1342_p7 = por %p1341_p10, %p1340_p8 }
 0x1c1   : > { %p1336_p0 = pneg %p1335_p12 }
 0x1c3   : > { %p1343_p13 = pnand %p1342_p7, %p1336_p0 }
 0x1c5   : > { %1346 = shalt.err (!%p1343_p13)
}
 0x1c6   : > { %s1347_s24 = scalar_lea.hbm %s1988_s21, 128  ;;  %s1351_s15 = scalar_lea.hbm %s2131_s20, 256 }
 0x1c7   : > { %p1348_p5 = scmp.ne.s32.totalorder %s1988_s21, %s1347_s24  ;;  %p1352_p3 = scmp.lt.u32.totalorder %s1988_s21, %s2131_s20 }
 0x1c8   : > { %p1353_p9 = scmp.lt.u32.totalorder %s1351_s15, %s1347_s24  ;;  %p1355_p6 = scmp.lt.u32.totalorder %s1347_s24, %s1988_s21 }
 0x1c9   : > { %p1349_p11 = pnand %p1348_p5, %p2132_p2 }
 0x1ca   : > { %p1354_p4 = por %p1353_p9, %p1352_p3 }
 0x1cb   : > { %p1350_p1 = pneg %p1349_p11 }
 0x1cc   : > { %p1356_p12 = por %p1355_p6, %p1354_p4 }
 0x1ce   : > { %p1357_p0 = pnand %p1356_p12, %p1350_p1 }
 0x1d0   : > { %1360 = shalt.err (!%p1357_p0)
}
 0x1d1   : > { %1094 = dma.vmem_to_hbm [thread:$0]  (%p2132_p2), %s701_s30, 128, %s1988_s21, %s682_s1  }
 0x1d2   : > { %s2133_s10 = sld [smem:[#allocation32_spill]]  ;;  %s713_s13 = sshll.u32 %s452_s18, 4  ;;  %s714_s13 = int_to_ptr.vmem [resolvable:$true] %s713_s13 }
 0x1d3   : > { %s687_s24 = scalar_lea.sflag [#allocation13], %s1866_s14  ;;  %s1361_s7 = scalar_lea.vmem %s714_s13, 128 }
 0x1d4   : > { %p1362_p8 = scmp.ne.s32.totalorder %s714_s13, %s1361_s7  ;;  %s1511_s15 = smov [#allocation12]  }
 0x1d5   : > { %s1365_s22 = sshll.u32 %s1511_s15, 4  ;;  %s1366_s22 = int_to_ptr.vmem [resolvable:$false] %s1365_s22 }
 0x1d6   : > { %p1363_p10 = pnand %p1362_p8, %p2132_p2  ;;  %s1367_s19 = scalar_lea.vmem %s1366_s22, 256 }
 0x1d7   : > { %p1368_p13 = scmp.lt.s32.totalorder %s714_s13, %s1366_s22  ;;  %p1369_p5 = scmp.lt.s32.totalorder %s1367_s19, %s1361_s7 }
 0x1d8   : > { %s2134_s6 = smov %s2133_s10  ;;  %s2015_s16 = scalar_lea.hbm %s2133_s10, %s937_s12 }
 0x1d9   : > { %p1364_p7 = pneg %p1363_p10  ;;  %p1370_p11 = por %p1369_p5, %p1368_p13 }
 0x1db   : > { %p1371_p1 = pnand %p1370_p11, %p1364_p7 }
 0x1dd   : > { %1374 = shalt.err (!%p1371_p1)
}
 0x1de   : > { %s1375_s14 = scalar_lea.hbm %s2015_s16, 128  ;;  %s1379_s8 = scalar_lea.hbm %s2134_s6, 256 }
 0x1df   : > { %p1376_p3 = scmp.ne.s32.totalorder %s2015_s16, %s1375_s14  ;;  %p1380_p6 = scmp.lt.u32.totalorder %s2015_s16, %s2134_s6 }
 0x1e0   : > { %p1381_p12 = scmp.lt.u32.totalorder %s1379_s8, %s1375_s14  ;;  %p1383_p8 = scmp.lt.u32.totalorder %s1375_s14, %s2015_s16 }
 0x1e1   : > { %p1377_p9 = pnand %p1376_p3, %p2132_p2 }
 0x1e2   : > { %p1382_p0 = por %p1381_p12, %p1380_p6 }
 0x1e3   : > { %p1378_p4 = pneg %p1377_p9 }
 0x1e4   : > { %p1384_p10 = por %p1383_p8, %p1382_p0 }
 0x1e6   : > { %p1385_p7 = pnand %p1384_p10, %p1378_p4 }
 0x1e8   : > { %1388 = shalt.err (!%p1385_p7)
}
 0x1e9   : > { %1095 = dma.vmem_to_hbm [thread:$0]  (%p2132_p2), %s714_s13, 128, %s2015_s16, %s687_s24  }
 0x1ea PF: > { %s2135_s30 = sld [smem:[#allocation23_spill]]  ;;  %s2136_s1 = sld [smem:[#allocation20_spill]] }
 0x1eb   : > { %s2137_s27 = sld [smem:[#allocation29_spill]] }
 0x1f0   : > { %p1119_p13 = scmp.ge.s32.totalorder %s2135_s30, 2  ;;  %s725_s17 = sand.u32 1, %s2136_s1  }
 0x1f1   : > { %p2138_p5 = scmp.ne.s32.totalorder %s2137_s27, 0  ;;  %s726_s10 = scalar_lea.sflag [#allocation5], %s725_s17 }
 0x1f3   : > { %p1112_p11 = pnand %p1119_p13, %p2138_p5 }
 0x1f5   : > { %1450 = dma.done.wait (!%p1112_p11), %s726_s10, 128  }
 0x1f6   : > { %1452 = vsyncadd (!%p1112_p11), %s726_s10, 4294967168  ;;  %s735_s7 = scalar_lea.sflag [#allocation13], %s725_s17 }
 0x1f7   : > { %1454 = dma.done.wait (!%p1112_p11), %s735_s7, 128  }
 0x1f8   : > { %1456 = vsyncadd (!%p1112_p11), %s735_s7, 4294967168  ;;  %s33_s11 = sadd.s32 1, %s2135_s30   ;;  %s2139_s16 = sld [smem:[#allocation26_spill]] }
 0x1f9   : > { %p30_p1 = scmp.ge.s32.totalorder %s33_s11, 8   ;;  %s2140_s13 = sld [smem:[#allocation27_spill]] }
 0x1fa   : > { %s2141_s8 = sld [smem:[#allocation22_spill]]  ;;  %s2142_s15 = sld [smem:[#allocation24_spill]] }
 0x1fb   : > { %s2143_s10 = sld [smem:[#allocation25_spill]]  ;;  %s2144_s24 = smov %s1463_s25 }
 0x1fc   : > { %s2145_s25 = smov %s1467_s26  ;;  %s2147_s27 = smov %s1475_s28 }
 0x1fd   : > { %s2148_s28 = smov %s1479_s29  ;;  %s2150_s30 = smov %s1491_s9 }
 0x1fe   : > { %s2146_s26 = smov %s2139_s16  ;;  %32 = sbr.rel (!%p30_p1) target bundleno = 19 (0x13), region = 157 }
 0x1ff   : > { %s2149_s29 = smov %s2140_s13 }
 0x200   : > { %s2151_s9 = smov %s2142_s15 }
 0x205   :  { %740 = vsyncpa [#allocation4], 1 }
 0x206   :  { %742 = vsyncpa [#allocation4 + $0x1], 1 }
 0x207   :  { %743 = vsyncpa [#allocation7], 1 }
 0x208   :  { %745 = vsyncpa [#allocation7 + $0x1], 1 }
 0x209   :  { %746 = vsyncpa [#allocation10], 1 }
 0x20a   :  { %748 = vsyncpa [#allocation10 + $0x1], 1 }
 0x20b   :  { %749 = vsyncpa [#allocation5], 1 }
 0x20c   :  { %751 = vsyncpa [#allocation5 + $0x1], 1 }
 0x20d   :  { %752 = vsyncpa [#allocation13], 1 }
 0x20e   :  { %754 = vsyncpa [#allocation13 + $0x1], 1 }

</bundles_post_ra>
